<compile_context>
chip_gen: v6e
topology: v6e:2x2x1
jax: 0.10.0
libtpu: 0.0.40
codegen_flags: <defaults>
</compile_context>

<pallas_src>
import numpy as np
import jax
import jax.numpy as jnp
from jax.experimental import pallas as pl
from jax.experimental.pallas import tpu as pltpu


def _phoible_kernel(ids_ref, mh_ref, w_ref, o_ref):
    """ids_ref : (R, pack) int32   -- pack token ids per 128-lane output row
       mh_ref  : (V, H)   float32  -- multi-hot table, VMEM-resident
       w_ref   : (H, E)   float32  -- projection weight, VMEM-resident
       o_ref   : (R, pack*E) float32 -- lane-dense packed output tile
    """
    V, H = mh_ref.shape
    E = w_ref.shape[1]
    R, pack = ids_ref.shape

    mh = mh_ref[...]
    w = w_ref[...]

    # Per-row popcount of the multi-hot table (denominator of the original forward).
    denom = jnp.sum(mh, axis=1, keepdims=True)                       # (V, 1)
    # Guard: a hypothetical all-zero multi-hot row would otherwise poison every
    # output row through the one-hot matmul (nan * 0 = nan).  By construction every
    # row has >= 1 hot slot, so this is a no-op for real tables.
    denom = jnp.maximum(denom, 1.0)

    # Tiny V-invariant table: (V,H)@(H,E) on the MXU, then exact divide.
    table = jnp.dot(mh, w, preferred_element_type=jnp.float32) / denom   # (V, E)

    ids = ids_ref[...]                                               # (R, pack) int32
    lane_v = jax.lax.broadcasted_iota(jnp.int32, (R, V), 1)

    # One-hot gather per packed slot, concatenated along lanes -> (R, pack*E).
    pieces = []
    for g in range(pack):
        onehot = jnp.where(ids[:, g:g + 1] == lane_v, 1.0, 0.0)      # (R, V) exact 0/1
        pieces.append(jnp.dot(onehot, table,
                              preferred_element_type=jnp.float32))   # (R, E)
    o_ref[...] = pieces[0] if pack == 1 else jnp.concatenate(pieces, axis=1)


def phoible_embeddings_forward(x_ids, multi_hot, weight, *, tm=4096):
    """x_ids: (B,S) int; multi_hot: (V,H) f32; weight: (H,E) f32 -> (B,S,E) f32."""
    B, S = x_ids.shape
    V, H = multi_hot.shape
    H2, E = weight.shape
    assert H == H2
    M = B * S

    # Pack `pack` tokens per 128-lane output row so stores are unmasked / lane-dense.
    pack = 128 // E if (E < 128 and 128 % E == 0) else 1
    row_align = 8 * pack                     # token rows per (8,128)-aligned slab

    if M <= tm:
        tm_rows = pl.cdiv(M, pack) * pack    # single step, full-array blocks
    else:
        tm_rows = max(row_align, (tm // row_align) * row_align)
    M_pad = pl.cdiv(M, tm_rows) * tm_rows
    steps = M_pad // tm_rows
    R_blk = tm_rows // pack

    ids_flat = x_ids.reshape(M).astype(jnp.int32)
    if M_pad != M:
        # Padded rows use token 0 and are sliced off below (cannot affect real rows).
        ids_flat = jnp.pad(ids_flat, (0, M_pad - M))
    ids_packed = ids_flat.reshape(M_pad // pack, pack)

    mh = multi_hot.astype(jnp.float32)
    w = weight.astype(jnp.float32)

    out_packed = pl.pallas_call(
        _phoible_kernel,
        out_shape=jax.ShapeDtypeStruct((M_pad // pack, pack * E), jnp.float32),
        grid=(steps,),
        in_specs=[
            pl.BlockSpec((R_blk, pack), lambda i: (i, 0)),   # token ids: only M*4 B of HBM reads
            pl.BlockSpec((V, H), lambda i: (0, 0)),          # multi-hot: fetched once, VMEM-resident
            pl.BlockSpec((H, E), lambda i: (0, 0)),          # weight:    fetched once, VMEM-resident
        ],
        out_specs=pl.BlockSpec((R_blk, pack * E), lambda i: (i, 0)),
        compiler_params=pltpu.CompilerParams(
            # Independent M tiles -> shardable across v7x's two TensorCores.
            dimension_semantics=("parallel",),
        ),
    )(ids_packed, mh, w)

    # (M_pad//pack, pack*E) -> (M_pad, E) is a free row-major metadata reshape.
    out = out_packed.reshape(M_pad, E)
    if M_pad != M:
        out = out[:M]
    return out.reshape(B, S, E)


def _build_synthetic_phoible_table(key, vocab, group_sizes):
    """Deterministically emulate create_multi_hot: one hot slot per feature group,
    plus a final 'unrecognized' slot; unrecognized tokens get only that slot."""
    size = int(sum(group_sizes))
    hot_size = size + 1
    mh = np.zeros((vocab, hot_size), dtype=np.float32)
    keys = jax.random.split(key, len(group_sizes) + 1)
    unrec = set(range(vocab - 2, vocab))     # last two vocab entries "unrecognized"
    offset = 0
    picks = []
    for gi, gs in enumerate(group_sizes):
        idx = np.asarray(jax.random.randint(keys[gi], (vocab,), 0, gs))
        picks.append(idx + offset)
        offset += gs
    for tok in range(vocab):
        if tok in unrec:
            mh[tok, -1] = 1.0
        else:
            for p in picks:
                mh[tok, p[tok]] = 1.0
    return jnp.asarray(mh)


if __name__ == "__main__":
    key = jax.random.PRNGKey(0)
    k_tab, k_w, k_ids = jax.random.split(key, 3)

    # Small shapes implied by the forward: x is (batch, seq) of token ids.
    B, S = 2, 8
    vocab = 20
    group_sizes = (12, 12, 12, 11)           # -> hot_size = 48 (incl. unrecognized slot)
    embedding_size = 32

    multi_hot = _build_synthetic_phoible_table(k_tab, vocab, group_sizes)  # (20, 48)
    hot_size = multi_hot.shape[1]
    # nn.init.normal_(self.weight): standard normal, shape (hot_size, embedding_size)
    weight = jax.random.normal(k_w, (hot_size, embedding_size), dtype=jnp.float32)
    x_ids = jax.random.randint(k_ids, (B, S), 0, vocab, dtype=jnp.int32)

    out = phoible_embeddings_forward(x_ids, multi_hot, weight)
    out = jax.block_until_ready(out)

    # Pure-JAX reference check (same semantics as the PyTorch forward).
    ph_ref = jnp.take(multi_hot, x_ids, axis=0)                       # (B, S, H)
    ref = (ph_ref @ weight) / jnp.sum(ph_ref, axis=2, keepdims=True)  # (B, S, E)
    np.testing.assert_allclose(np.asarray(out), np.asarray(ref), rtol=1e-5, atol=1e-5)

    print("KERNEL_OK")
</pallas_src>

<mosaic_0001>
module attributes {stable_mosaic.version = 11 : i64} {
  func.func @_phoible_kernel(%arg0: i32, %arg1: memref<4x4xi32, #tpu.memory_space<vmem>>, %arg2: memref<20x48xf32, #tpu.memory_space<vmem>>, %arg3: memref<48x32xf32, #tpu.memory_space<vmem>>, %arg4: memref<4x128xf32, #tpu.memory_space<vmem>>) attributes {dimension_semantics = [#tpu.dimension_semantics<parallel>], iteration_bounds = array<i64: 1>, scalar_prefetch = 0 : i64, scratch_operands = 0 : i64, tpu.core_type = #tpu.core_type<tc>, window_params = [{transform_indices = @transform_0, window_bounds = array<i64: 4, 4>}, {pipeline_mode = #tpu.pipeline_mode<synchronous>, transform_indices = @transform_1, window_bounds = array<i64: 20, 48>}, {pipeline_mode = #tpu.pipeline_mode<synchronous>, transform_indices = @transform_2, window_bounds = array<i64: 48, 32>}, {transform_indices = @transform_3, window_bounds = array<i64: 4, 128>}]} {
    %c0 = arith.constant 0 : index
    %c0_0 = arith.constant 0 : index
    %0 = vector.load %arg2[%c0, %c0_0] : memref<20x48xf32, #tpu.memory_space<vmem>>, vector<20x48xf32>
    %c0_1 = arith.constant 0 : index
    %c0_2 = arith.constant 0 : index
    %1 = vector.load %arg3[%c0_1, %c0_2] : memref<48x32xf32, #tpu.memory_space<vmem>>, vector<48x32xf32>
    %cst = arith.constant dense<0.000000e+00> : vector<20xf32>
    %2 = vector.multi_reduction <add>, %0, %cst [1] : vector<20x48xf32> to vector<20xf32>
    %3 = vector.shape_cast %2 : vector<20xf32> to vector<20x1xf32>
    %cst_3 = arith.constant 1.000000e+00 : f32
    %4 = vector.broadcast %cst_3 : f32 to vector<20x1xf32>
    %5 = arith.maximumf %3, %4 : vector<20x1xf32>
    %cst_4 = arith.constant dense<0.000000e+00> : vector<20x32xf32>
    %6 = tpu.matmul %0, %1, %cst_4 {dimension_numbers = #tpu.dot_dimension_numbers<[1], [0], [0], [1], [0, 0, 1, 1], [], []>} : vector<20x48xf32>, vector<48x32xf32>, vector<20x32xf32> -> vector<20x32xf32>
    %7 = vector.broadcast %5 : vector<20x1xf32> to vector<20x32xf32>
    %8 = arith.divf %6, %7 : vector<20x32xf32>
    %c0_5 = arith.constant 0 : index
    %c0_6 = arith.constant 0 : index
    %9 = vector.load %arg1[%c0_5, %c0_6] : memref<4x4xi32, #tpu.memory_space<vmem>>, vector<4x4xi32>
    %10 = tpu.iota {dimensions = array<i32: 1>} : vector<4x20xi32>
    %11 = vector.extract_strided_slice %9 {offsets = [0, 0], sizes = [4, 1], strides = [1, 1]} : vector<4x4xi32> to vector<4x1xi32>
    %12 = vector.broadcast %11 : vector<4x1xi32> to vector<4x20xi32>
    %13 = arith.cmpi eq, %12, %10 : vector<4x20xi32>
    %cst_7 = arith.constant 1.000000e+00 : f32
    %cst_8 = arith.constant 0.000000e+00 : f32
    %14 = vector.broadcast %cst_7 : f32 to vector<4x20xf32>
    %15 = vector.broadcast %cst_8 : f32 to vector<4x20xf32>
    %16 = arith.select %13, %14, %15 : vector<4x20xi1>, vector<4x20xf32>
    %cst_9 = arith.constant dense<0.000000e+00> : vector<4x32xf32>
    %17 = tpu.matmul %16, %8, %cst_9 {dimension_numbers = #tpu.dot_dimension_numbers<[1], [0], [0], [1], [0, 0, 1, 1], [], []>} : vector<4x20xf32>, vector<20x32xf32>, vector<4x32xf32> -> vector<4x32xf32>
    %18 = vector.extract_strided_slice %9 {offsets = [0, 1], sizes = [4, 1], strides = [1, 1]} : vector<4x4xi32> to vector<4x1xi32>
    %19 = vector.broadcast %18 : vector<4x1xi32> to vector<4x20xi32>
    %20 = arith.cmpi eq, %19, %10 : vector<4x20xi32>
    %cst_10 = arith.constant 1.000000e+00 : f32
    %cst_11 = arith.constant 0.000000e+00 : f32
    %21 = vector.broadcast %cst_10 : f32 to vector<4x20xf32>
    %22 = vector.broadcast %cst_11 : f32 to vector<4x20xf32>
    %23 = arith.select %20, %21, %22 : vector<4x20xi1>, vector<4x20xf32>
    %cst_12 = arith.constant dense<0.000000e+00> : vector<4x32xf32>
    %24 = tpu.matmul %23, %8, %cst_12 {dimension_numbers = #tpu.dot_dimension_numbers<[1], [0], [0], [1], [0, 0, 1, 1], [], []>} : vector<4x20xf32>, vector<20x32xf32>, vector<4x32xf32> -> vector<4x32xf32>
    %25 = vector.extract_strided_slice %9 {offsets = [0, 2], sizes = [4, 1], strides = [1, 1]} : vector<4x4xi32> to vector<4x1xi32>
    %26 = vector.broadcast %25 : vector<4x1xi32> to vector<4x20xi32>
    %27 = arith.cmpi eq, %26, %10 : vector<4x20xi32>
    %cst_13 = arith.constant 1.000000e+00 : f32
    %cst_14 = arith.constant 0.000000e+00 : f32
    %28 = vector.broadcast %cst_13 : f32 to vector<4x20xf32>
    %29 = vector.broadcast %cst_14 : f32 to vector<4x20xf32>
    %30 = arith.select %27, %28, %29 : vector<4x20xi1>, vector<4x20xf32>
    %cst_15 = arith.constant dense<0.000000e+00> : vector<4x32xf32>
    %31 = tpu.matmul %30, %8, %cst_15 {dimension_numbers = #tpu.dot_dimension_numbers<[1], [0], [0], [1], [0, 0, 1, 1], [], []>} : vector<4x20xf32>, vector<20x32xf32>, vector<4x32xf32> -> vector<4x32xf32>
    %32 = vector.extract_strided_slice %9 {offsets = [0, 3], sizes = [4, 1], strides = [1, 1]} : vector<4x4xi32> to vector<4x1xi32>
    %33 = vector.broadcast %32 : vector<4x1xi32> to vector<4x20xi32>
    %34 = arith.cmpi eq, %33, %10 : vector<4x20xi32>
    %cst_16 = arith.constant 1.000000e+00 : f32
    %cst_17 = arith.constant 0.000000e+00 : f32
    %35 = vector.broadcast %cst_16 : f32 to vector<4x20xf32>
    %36 = vector.broadcast %cst_17 : f32 to vector<4x20xf32>
    %37 = arith.select %34, %35, %36 : vector<4x20xi1>, vector<4x20xf32>
    %cst_18 = arith.constant dense<0.000000e+00> : vector<4x32xf32>
    %38 = tpu.matmul %37, %8, %cst_18 {dimension_numbers = #tpu.dot_dimension_numbers<[1], [0], [0], [1], [0, 0, 1, 1], [], []>} : vector<4x20xf32>, vector<20x32xf32>, vector<4x32xf32> -> vector<4x32xf32>
    %39 = tpu.concatenate %17, %24, %31, %38 in 1 : vector<4x32xf32>, vector<4x32xf32>, vector<4x32xf32>, vector<4x32xf32> -> vector<4x128xf32>
    %c0_19 = arith.constant 0 : index
    %c0_20 = arith.constant 0 : index
    %40 = vector.load %arg4[%c0_19, %c0_20] : memref<4x128xf32, #tpu.memory_space<vmem>>, vector<4x128xf32>
    tpu.vector_store %arg4[%c0_19, %c0_20], %39 {strides = array<i32>} : memref<4x128xf32, #tpu.memory_space<vmem>>, vector<4x128xf32>,
    return
  }
  func.func @transform_0(%arg0: i32) -> (i32, i32) {
    %c0_i32 = arith.constant 0 : i32
    %c0_i32_0 = arith.constant 0 : i32
    return %arg0, %c0_i32 : i32, i32
  }
  func.func @transform_1(%arg0: i32) -> (i32, i32) {
    %c0_i32 = arith.constant 0 : i32
    %c0_i32_0 = arith.constant 0 : i32
    %c0_i32_1 = arith.constant 0 : i32
    return %c0_i32, %c0_i32_0 : i32, i32
  }
  func.func @transform_2(%arg0: i32) -> (i32, i32) {
    %c0_i32 = arith.constant 0 : i32
    %c0_i32_0 = arith.constant 0 : i32
    %c0_i32_1 = arith.constant 0 : i32
    return %c0_i32, %c0_i32_0 : i32, i32
  }
  func.func @transform_3(%arg0: i32) -> (i32, i32) {
    %c0_i32 = arith.constant 0 : i32
    %c0_i32_0 = arith.constant 0 : i32
    return %arg0, %c0_i32 : i32, i32
  }
}

</mosaic_0001>

<bundles_post_ra>
// kernel: tpu_custom_call.1
= control target key start
LH: loop header
LB: loop body
LE: loop exit
PB: predicated region body
PF: predicated region fallthrough
CT: control target
= control target key end

     0   :  { %v622_v1 = vmov 0.0   ;;  %vm623_vm0 = vmmov 0   ;;  %vm31_vm1 = vcmask 388096   ;;  %vm24_vm2 = vcmask 392192   ;;  %s734_s0 = inlined_call_operand.vmem [shape: s32[4,4], index: 0, kind: input, shape index: {}]   ;;  %s735_s1 = inlined_call_operand.vmem [shape: f32[20,48], index: 1, kind: input, shape index: {}]   ;;  %s736_s2 = inlined_call_operand.vmem [shape: f32[48,32], index: 2, kind: input, shape index: {}]   ;;  %s737_s3 = inlined_call_operand.hbm [shape: f32[4,128], index: 3, kind: output, shape index: {}]  }
   0x1   :  { %v23_v0 = vld [vmem:[%s736_s2 + $0x28] sm:$0xff]  ;;  %522 = vmatprep.subr.mxu0 %v622_v1  ;;  %v22_v2 = vld [vmem:[%s736_s2 + $0x20] sm:$0xff]  ;;  %534 = vmatprep.mubr.msk.f32.mxu0 %vm623_vm0, %v622_v1  ;;  %v17_v4 = vld [vmem:[%s735_s1 + $0x10] sm:$0xf]  ;;  %v624_v5 = vmov 0   ;;  %v625_v9 = vmov 1  }
   0x2   :  { %523 = vmatpush3.msra.mxu0 %v23_v0  ;;  %v15_v3 = vld [vmem:[%s735_s1] sm:$0xff]  ;;  %589 = vset.pattern.permute.xlu1 %v624_v5  ;;  %v21_v6 = vld [vmem:[%s736_s2 + $0x18] sm:$0xff]  ;;  %v32_v7 = vsel %vm31_vm1, %v17_v4, 0.0  ;;  %v16_v10 = vld [vmem:[%s735_s1 + $0x8] sm:$0xff] }
   0x3   :  { %524 = vmatprep.subr.mxu0 %v622_v1  ;;  %v25_v8 = vsel %vm24_vm2, %v15_v3, 0.0  ;;  %590 = vset.pattern.permute.xlu0 %v625_v9 }
   0x4   :  { %525 = vmatpush3.msra.mxu0 %v22_v2  ;;  %33 = vadd.xlane.f32.xlu0 %v32_v7 }
   0x5   :  { %8 = vsyncpa [#allocation3], 0  ;;  %526 = vmatprep.subr.mxu0 %v622_v1  ;;  %v20_v11 = vld [vmem:[%s736_s2 + $0x10] sm:$0xff]  ;;  %26 = vadd.xlane.f32.xlu1 %v25_v8  ;;  %v28_v12 = vsel %vm24_vm2, %v16_v10, 0.0  ;;  %v19_v13 = vld [vmem:[%s736_s2 + $0x8] sm:$0xff]  ;;  %v626_v16 = vmov 2   ;;  %v134_v27 = vlaneseq }
   0x6   :  { %527 = vmatpush3.msra.mxu0 %v21_v6  ;;  %543 = vmatprep.subr.mxu1 %v622_v1  ;;  %v18_v14 = vld [vmem:[%s736_s2] sm:$0xff]  ;;  %v627_v17 = vmov 3   ;;  %vm145_vm3 = vcmask 1043456   ;;  %vm141_vm6 = vcmask 162816   ;;  %s629_s2 = smov 64   ;;  %s630_s4 = smov 96  }
   0x7   :  { %528 = vmatprep.subr.mxu0 %v622_v1  ;;  %549 = vmatprep.mubr.msk.f32.mxu1 %vm623_vm0, %v622_v1  ;;  %v133_v15 = vld [vmem:[%s734_s0] sm:$0xf]  ;;  %v135_v31 = vand.u32 127, %v134_v27  ;;  %s628_s0 = smov 32   ;;  %vm465_vm9 = vcmask 261120   ;;  %vm467_vm10 = vcmask 523264  }
   0x8   :  { %529 = vmatpush3.msra.mxu0 %v20_v11  ;;  %29 = vadd.xlane.f32.xlu0 %v28_v12  ;;  %s631_s5 = smov [#allocation2]   ;;  %vm469_vm11 = vcmask 785408  }
   0x9   :  { %530 = vmatprep.subr.mxu0 %v622_v1  ;;  %s478_s6 = sshll.u32 %s631_s5, 4  ;;  %s479_s6 = int_to_ptr.vmem [resolvable:$true] %s478_s6 }
   0xa   :  { %531 = vmatpush3.msra.mxu0 %v19_v13  ;;  %s600_s7 = scalar_lea.vmem %s479_s6, 64  ;;  %p605_p1 = scmp.lt.s32.totalorder %s479_s6, %s479_s6 }
   0xb   :  { %532 = vmatprep.subr.mxu0 %v622_v1  ;;  %p601_p0 = scmp.ne.s32.totalorder %s479_s6, %s600_s7  ;;  %p606_p2 = scmp.lt.s32.totalorder %s600_s7, %s600_s7 }
   0xc   :  { %533 = vmatpush3.msra.mxu0 %v18_v14 }
   0xd   :  { %535 = vmatmul.mubr.msk.f32.vlgmr.msra.gmra.mxu0 %vm24_vm2, %v15_v3  ;;  %570 = vmatprep.subr.mxu0 %v622_v1  ;;  %p607_p3 = por %p606_p2, %p605_p1 }
   0xe   :  { %537 = vmatprep.mubr.msk.f32.mxu0 %vm623_vm0, %v622_v1 }
   0xf   :  { %p608_p4 = pnand %p607_p3, %p601_p0 }
  0x11   :  { %538 = vmatmul.mubr.msk.f32.gmra.mxu0 %vm24_vm2, %v16_v10 }
  0x12   :  { %540 = vmatprep.mubr.msk.f32.mxu0 %vm623_vm0, %v622_v1 }
  0x15   :  { %541 = vmatmul.mubr.msk.f32.gmra.mxu0 %vm24_vm2, %v17_v4 }
  0x16   :  { %137 = vperm.xlu1 %589, %v133_v15   ;;  %576 = vmatprep.mubr.msk.f32.mxu0 %vm623_vm0, %v622_v1 }
  0x1a   :  { %591 = vset.pattern.permute.xlu1 %v626_v16 }
  0x1b   :  { %298 = vperm.xlu1 %591, %v133_v15  }
  0x1e   :  { %220 = vperm.xlu0 %590, %v133_v15  }
  0x1f   :  { %592 = vset.pattern.permute.xlu1 %v627_v17 }
  0x20   :  { %376 = vperm.xlu1 %592, %v133_v15  }
  0x22   :  { %593 = vset.pattern.permute.xlu0 %v627_v17 }
  0x8d   :  { %v34_v18 = vpop.xlane.xlu0 %33 }
  0x8e   :  { %v37_v20 = vmax.f32 %v34_v18, 1.0  ;;  %v27_v21 = vpop.xlane.xlu1 %26 }
  0x8f   :  { %v35_v23 = vmax.f32 %v27_v21, 1.0 }
  0x90   :  { %594 = vrcp.f32 %v37_v20 }
  0x91   :  { %v30_v19 = vpop.xlane.xlu0 %29 }
  0x92   :  { %v36_v22 = vmax.f32 %v30_v19, 1.0  ;;  %v138_v24 = vpop.permute.xlu1 %137 }
  0x93   :  { %vm139_vm4 = vcmp.eq.s32.totalorder %v138_v24, %v135_v31 }
  0x94   :  { %596 = vrcp.f32 %v36_v22  ;;  %v140_v41 = vsel %vm139_vm4, 1.0, %v622_v1 }
  0x95   :  { %598 = vrcp.f32 %v35_v23 }
  0x96   :  { %v299_v28 = vpop.permute.xlu1 %298 }
  0x97   :  { %vm300_vm8 = vcmp.eq.s32.totalorder %v299_v28, %v135_v31 }
  0x98   :  { %v301_v45 = vsel %vm300_vm8, 1.0, %v622_v1 }
  0x99   :  { %v221_v42 = vpop.permute.xlu0 %220 }
  0x9a   :  { %vm222_vm7 = vcmp.eq.s32.totalorder %v221_v42, %v135_v31 }
  0x9b   :  { %v377_v36 = vpop.permute.xlu1 %376  ;;  %v223_v44 = vsel %vm222_vm7, 1.0, %v622_v1 }
  0x9c   :  { %vm378_vm5 = vcmp.eq.s32.totalorder %v377_v36, %v135_v31 }
  0x9d   :  { %v595_v32 = vpop.eup %594  ;;  %v379_v43 = vsel %vm378_vm5, 1.0, %v622_v1 }
  0xa1   :  { %v597_v33 = vpop.eup %596 }
  0xa2   :  { %v599_v37 = vpop.eup %598 }
  0xcd   :  { %v113_v25 = vpop.f32.mrf.mxu0 }
  0xce   :  { %v128_v40 = vmul.f32 %v599_v37, %v113_v25 }
  0xcf   :  { %v536_v26 = vpop.f32.mrf.mxu0 }
  0xd1   :  { %v118_v29 = vpop.f32.mrf.mxu0 }
  0xd2   :  { %v130_v39 = vmul.f32 %v597_v33, %v118_v29 }
  0xd3   :  { %v539_v30 = vpop.f32.mrf.mxu0 }
  0xd5   :  { %v123_v34 = vpop.f32.mrf.mxu0 }
  0xd6   :  { %v132_v35 = vmul.f32 %v595_v32, %v123_v34 }
  0xd7   :  { %v542_v38 = vpop.f32.mrf.mxu0 }
  0xd8   :  { %544 = vmatpush3.msk.msra.mxu1 %vm145_vm3, %v132_v35  ;;  %571 = vmatpush3.msk.msra.mxu0 %vm145_vm3, %v132_v35 }
  0xd9   :  { %545 = vmatprep.subr.mxu1 %v622_v1  ;;  %572 = vmatprep.subr.mxu0 %v622_v1 }
  0xda   :  { %546 = vmatpush3.msra.mxu1 %v130_v39  ;;  %573 = vmatpush3.msra.mxu0 %v130_v39 }
  0xdb   :  { %547 = vmatprep.subr.mxu1 %v622_v1  ;;  %574 = vmatprep.subr.mxu0 %v622_v1 }
  0xdc   :  { %548 = vmatpush3.msra.mxu1 %v128_v40  ;;  %575 = vmatpush3.msra.mxu0 %v128_v40 }
  0xdd   :  { %550 = vmatmul.mubr.msk.f32.vlgmr.msra.gmra.mxu1 %vm141_vm6, %v140_v41  ;;  %552 = vmatprep.subr.mxu1 %v622_v1 }
  0xde   :  { %553 = vmatpush3.msk.msra.mxu1 %vm145_vm3, %v132_v35  ;;  %558 = vmatprep.mubr.msk.f32.mxu1 %vm623_vm0, %v622_v1 }
  0xdf   :  { %554 = vmatprep.subr.mxu1 %v622_v1  ;;  %577 = vmatmul.mubr.msk.f32.vlgmr.msra.gmra.mxu0 %vm141_vm6, %v379_v43 }
  0xe0   :  { %555 = vmatpush3.msra.mxu1 %v130_v39 }
  0xe1   :  { %556 = vmatprep.subr.mxu1 %v622_v1 }
  0xe2   :  { %557 = vmatpush3.msra.mxu1 %v128_v40 }
  0xe3   :  { %559 = vmatmul.mubr.msk.f32.vlgmr.msra.gmra.mxu1 %vm141_vm6, %v223_v44  ;;  %561 = vmatprep.subr.mxu1 %v622_v1 }
  0xe4   :  { %562 = vmatpush3.msk.msra.mxu1 %vm145_vm3, %v132_v35  ;;  %567 = vmatprep.mubr.msk.f32.mxu1 %vm623_vm0, %v622_v1 }
  0xe5   :  { %563 = vmatprep.subr.mxu1 %v622_v1 }
  0xe6   :  { %564 = vmatpush3.msra.mxu1 %v130_v39 }
  0xe7   :  { %565 = vmatprep.subr.mxu1 %v622_v1 }
  0xe8   :  { %566 = vmatpush3.msra.mxu1 %v128_v40 }
  0xe9   :  { %568 = vmatmul.mubr.msk.f32.vlgmr.msra.gmra.mxu1 %vm141_vm6, %v301_v45 }
 0x19d   :  { %v215_v46 = vpop.f32.mrf.mxu1 }
 0x19f   :  { %v551_v47 = vpop.f32.mrf.mxu1  ;;  %v449_v48 = vpop.f32.mrf.mxu0 }
 0x1a1   :  { %v578_v49 = vpop.f32.mrf.mxu0 }
 0x1a3   :  { %v293_v50 = vpop.f32.mrf.mxu1 }
 0x1a4   :  { %454 = vrot.lane.b32.xlu1 %v293_v50, %s628_s0 }
 0x1a5   :  { %v560_v51 = vpop.f32.mrf.mxu1 }
 0x1a9   :  { %v371_v52 = vpop.f32.mrf.mxu1 }
 0x1aa   :  { %458 = vrot.lane.b32.xlu1 %v371_v52, %s629_s2 }
 0x1ab   :  { %v569_v53 = vpop.f32.mrf.mxu1 }
 0x1ae   :  { %462 = vrot.lane.b32.xlu1 %v449_v48, %s630_s4 }
 0x216   :  { %v455_v54 = vpop.permute.xlu1 %454 }
 0x217   :  { %v466_v56 = vsel %vm465_vm9, %v215_v46, %v455_v54 }
 0x21c   :  { %v459_v55 = vpop.permute.xlu1 %458 }
 0x21d   :  { %v468_v57 = vsel %vm467_vm10, %v466_v56, %v459_v55 }
 0x220   :  { %v463_v58 = vpop.permute.xlu1 %462 }
 0x221   :  { %v470_v59 = vsel %vm469_vm11, %v468_v57, %v463_v58 }
 0x222   :  { %471 = vst [vmem:[#allocation2] sm:$0xf] %v470_v59 }
 0x223   :  { %611 = shalt.err (!%p608_p4)
}
 0x224   :  { %481 = dma.vmem_to_hbm [thread:$0]  %s479_s6, 64, %s737_s3, [#allocation3]  }
 0x225   :  { %620 = dma.done.wait [#allocation3], 64  }
 0x226   :  { %621 = vsyncadd [#allocation3], 4294967232 }
 0x227   :  { %485 = vsyncpa [#allocation3], 1 }

</bundles_post_ra>
